<compile_context>
chip_gen: v7x
topology: tpu7x:2x2x1
jax: 0.10.0
libtpu: 0.0.40
codegen_flags: <defaults>
</compile_context>

<pallas_src>
import functools

import jax
import jax.numpy as jnp
from jax.experimental import pallas as pl
from jax.experimental.pallas import tpu as pltpu


def _focal_kernel(logit_ref, tgt_ref, alpha_ref, out_ref, acc_ref, *,
                  gamma, smooth, num_class, valid_len, tile_l):
    li = pl.program_id(1)

    @pl.when(li == 0)
    def _():
        acc_ref[...] = jnp.zeros_like(acc_ref)

    x = logit_ref[0].astype(jnp.float32)          # (C, TL)  classes x pixels
    tgt = tgt_ref[0]                              # (1, TL)  int32

    # one-hot mask (scatter_): class index on the sublane axis.
    cls_idx = jax.lax.broadcasted_iota(jnp.int32, x.shape, 0)     # (C, TL)
    mask = (cls_idx == tgt).astype(jnp.float32)                   # (C, TL)

    # Numerically-stable softmax over the class (sublane) axis; only
    # prob[target] is needed downstream.
    mx = jnp.max(x, axis=0, keepdims=True)                        # (1, TL)
    e = jnp.exp(x - mx)                                           # (C, TL)
    s = jnp.sum(e, axis=0, keepdims=True)                         # (1, TL)
    e_t = jnp.sum(mask * e, axis=0, keepdims=True)                # (1, TL)
    p_t = e_t * pl.reciprocal(s, approx=True)                     # prob[target]

    # Folded label smoothing (sum(prob) == 1):
    #   sum(clip(one_hot, low, high) * prob) = low + (high - low) * p_t
    low = smooth / max(num_class - 1, 1)   # guard C==1 (original divides by 0)
    high = 1.0 - smooth
    pt = low + (high - low) * p_t + smooth
    logpt = jnp.log(pt)

    # alpha[target]: reuse the same one-hot mask (lane-broadcast of (C,1)).
    alpha_t = jnp.sum(mask * alpha_ref[...], axis=0, keepdims=True)

    one_minus = 1.0 - pt
    g = float(gamma)
    if g == 2.0:
        focal = one_minus * one_minus
    elif g == 1.0:
        focal = one_minus
    elif g == 0.0:
        focal = jnp.ones_like(one_minus)
    elif g.is_integer() and 0.0 < g <= 8.0:
        focal = one_minus
        for _ in range(int(g) - 1):
            focal = focal * one_minus
    else:
        focal = jnp.power(one_minus, g)

    loss = -alpha_t * focal * logpt                               # (1, TL)

    # Mask the padded tail pixels (only traced when padding exists).
    if valid_len % tile_l != 0:
        pos = li * tile_l + jax.lax.broadcasted_iota(jnp.int32, loss.shape, 1)
        loss = jnp.where(pos < valid_len, loss, 0.0)

    # Elementwise (VPU) accumulation every step; no per-step cross-lane reduce.
    acc_ref[...] += loss

    @pl.when(li == pl.num_programs(1) - 1)
    def _():
        total = jnp.sum(acc_ref[...])               # one XLU reduce per image
        out_ref[...] = jnp.broadcast_to(total, out_ref.shape)


def focal_loss(logit_nchw, target_n1hw, *, alpha=None, gamma=2.0,
               balance_index=0, smooth=1e-5, size_average=True, tl=8192):
    """Pallas implementation of FocalLoss.forward."""
    n, c, h, w = logit_nchw.shape
    l = h * w
    m = n * l

    # Natural NCHW layout reshaped to (N, C, H*W): no transpose, pure view.
    logits = logit_nchw.reshape(n, c, l)
    targets = target_n1hw.reshape(n, 1, l).astype(jnp.int32)

    # alpha handling (mirrors the module __init__/forward); default None -> ones.
    if alpha is None:
        alpha_vec = jnp.ones((c,), jnp.float32)
    elif isinstance(alpha, float):
        alpha_vec = jnp.full((c,), 1.0 - alpha, jnp.float32)
        alpha_vec = alpha_vec.at[balance_index].set(alpha)
    else:
        alpha_vec = jnp.asarray(alpha, jnp.float32)
        alpha_vec = alpha_vec / alpha_vec.sum()
    alpha_mat = alpha_vec.reshape(c, 1)

    # Lane-dense tile along the pixel axis (multiple of 128); pad + mask tail.
    tl = max(128, (int(tl) // 128) * 128)
    tile_l = min(tl, ((l + 127) // 128) * 128)
    l_pad = ((l + tile_l - 1) // tile_l) * tile_l
    if l_pad != l:
        logits = jnp.pad(logits, ((0, 0), (0, 0), (0, l_pad - l)))
        targets = jnp.pad(targets, ((0, 0), (0, 0), (0, l_pad - l)))

    grid = (n, l_pad // tile_l)

    kernel = functools.partial(
        _focal_kernel, gamma=float(gamma), smooth=float(smooth),
        num_class=c, valid_len=l, tile_l=tile_l)

    cost = pl.CostEstimate(
        flops=12 * m * c,
        transcendentals=m * (c + 2),
        bytes_accessed=m * c * 4 + m * 4 + n * 128 * 4)

    out = pl.pallas_call(
        kernel,
        out_shape=jax.ShapeDtypeStruct((n, 1, 128), jnp.float32),
        grid_spec=pltpu.PrefetchScalarGridSpec(
            num_scalar_prefetch=0,
            grid=grid,
            in_specs=[
                # logits tile: classes on sublanes, TL pixels on lanes
                pl.BlockSpec((1, c, tile_l), lambda ni, li: (ni, 0, li)),
                # targets tile
                pl.BlockSpec((1, 1, tile_l), lambda ni, li: (ni, 0, li)),
                # alpha (small, resident)
                pl.BlockSpec((c, 1), lambda ni, li: (0, 0)),
            ],
            out_specs=pl.BlockSpec((1, 1, 128), lambda ni, li: (ni, 0, 0)),
            scratch_shapes=[pltpu.VMEM((1, tile_l), jnp.float32)],
        ),
        compiler_params=pltpu.CompilerParams(
            dimension_semantics=("parallel", "arbitrary"),
            vmem_limit_bytes=32 * 1024 * 1024),
        cost_estimate=cost,
    )(logits, targets, alpha_mat)

    total = jnp.sum(out[:, 0, 0])                 # combine per-image partials
    if size_average:
        return total / jnp.float32(m)
    return total


if __name__ == "__main__":
    key = jax.random.PRNGKey(0)
    k1, k2 = jax.random.split(key)

    N, C, H, W = 2, 4, 16, 16
    logits = jax.random.normal(k1, (N, C, H, W), dtype=jnp.float32)
    targets = jax.random.randint(k2, (N, 1, H, W), 0, C, dtype=jnp.int32)

    loss = focal_loss(logits, targets, gamma=2.0, smooth=1e-5)
    jax.block_until_ready(loss)
    print("KERNEL_OK")
</pallas_src>

<mosaic_0001>
module attributes {stable_mosaic.version = 11 : i64} {
  func.func @_focal_kernel(%arg0: i32, %arg1: i32, %arg2: memref<1x4x256xf32, #tpu.memory_space<vmem>>, %arg3: memref<1x1x256xi32, #tpu.memory_space<vmem>>, %arg4: memref<4x1xf32, #tpu.memory_space<vmem>>, %arg5: memref<1x1x128xf32, #tpu.memory_space<vmem>>, %arg6: memref<1x256xf32, #tpu.memory_space<vmem>>) attributes {dimension_semantics = [#tpu.dimension_semantics<parallel>, #tpu.dimension_semantics<arbitrary>], iteration_bounds = array<i64: 2, 1>, scalar_prefetch = 0 : i64, scratch_operands = 1 : i64, tpu.core_type = #tpu.core_type<tc>, window_params = [{transform_indices = @transform_0, window_bounds = array<i64: 1, 4, 256>}, {transform_indices = @transform_1, window_bounds = array<i64: 1, 1, 256>}, {pipeline_mode = #tpu.pipeline_mode<synchronous>, transform_indices = @transform_2, window_bounds = array<i64: 4, 1>}, {transform_indices = @transform_3, window_bounds = array<i64: 1, 1, 128>}]} {
    %c0_i32 = arith.constant 0 : i32
    %0 = arith.cmpi eq, %arg1, %c0_i32 : i32
    %1 = arith.extui %0 : i1 to i32
    %c0_i32_0 = arith.constant 0 : i32
    %2 = arith.cmpi ne, %1, %c0_i32_0 : i32
    scf.if %2 {
      %cst_22 = arith.constant 0.000000e+00 : f32
      %49 = vector.broadcast %cst_22 : f32 to vector<1x256xf32>
      %c0_23 = arith.constant 0 : index
      %c0_24 = arith.constant 0 : index
      %50 = vector.load %arg6[%c0_23, %c0_24] : memref<1x256xf32, #tpu.memory_space<vmem>>, vector<1x256xf32>
      tpu.vector_store %arg6[%c0_23, %c0_24], %49 {strides = array<i32>} : memref<1x256xf32, #tpu.memory_space<vmem>>, vector<1x256xf32>,
    } else {
    }
    %c0 = arith.constant 0 : index
    %c0_1 = arith.constant 0 : index
    %c0_2 = arith.constant 0 : index
    %3 = vector.load %arg2[%c0, %c0_1, %c0_2] : memref<1x4x256xf32, #tpu.memory_space<vmem>>, vector<1x4x256xf32>
    %4 = vector.shape_cast %3 : vector<1x4x256xf32> to vector<4x256xf32>
    %c0_3 = arith.constant 0 : index
    %c0_4 = arith.constant 0 : index
    %c0_5 = arith.constant 0 : index
    %5 = vector.load %arg3[%c0_3, %c0_4, %c0_5] : memref<1x1x256xi32, #tpu.memory_space<vmem>>, vector<1x1x256xi32>
    %6 = vector.shape_cast %5 : vector<1x1x256xi32> to vector<1x256xi32>
    %7 = tpu.iota {dimensions = array<i32: 0>} : vector<4x256xi32>
    %8 = vector.broadcast %6 : vector<1x256xi32> to vector<4x256xi32>
    %9 = arith.cmpi eq, %7, %8 : vector<4x256xi32>
    %10 = arith.extui %9 : vector<4x256xi1> to vector<4x256xi32>
    %11 = arith.sitofp %10 : vector<4x256xi32> to vector<4x256xf32>
    %cst = arith.constant dense<0xFF800000> : vector<256xf32>
    %12 = vector.multi_reduction <maximumf>, %4, %cst [0] : vector<4x256xf32> to vector<256xf32>
    %13 = vector.shape_cast %12 : vector<256xf32> to vector<1x256xf32>
    %14 = vector.broadcast %13 : vector<1x256xf32> to vector<4x256xf32>
    %15 = arith.subf %4, %14 : vector<4x256xf32>
    %16 = math.exp %15 : vector<4x256xf32>
    %cst_6 = arith.constant dense<0.000000e+00> : vector<256xf32>
    %17 = vector.multi_reduction <add>, %16, %cst_6 [0] : vector<4x256xf32> to vector<256xf32>
    %18 = vector.shape_cast %17 : vector<256xf32> to vector<1x256xf32>
    %19 = arith.mulf %11, %16 : vector<4x256xf32>
    %cst_7 = arith.constant dense<0.000000e+00> : vector<256xf32>
    %20 = vector.multi_reduction <add>, %19, %cst_7 [0] : vector<4x256xf32> to vector<256xf32>
    %21 = vector.shape_cast %20 : vector<256xf32> to vector<1x256xf32>
    %22 = tpu.reciprocal %18 {approx = true} : vector<1x256xf32> -> vector<1x256xf32>
    %23 = arith.mulf %21, %22 : vector<1x256xf32>
    %cst_8 = arith.constant 0.999986648 : f32
    %24 = vector.broadcast %cst_8 : f32 to vector<1x256xf32>
    %25 = arith.mulf %24, %23 : vector<1x256xf32>
    %cst_9 = arith.constant 3.33333332E-6 : f32
    %26 = vector.broadcast %cst_9 : f32 to vector<1x256xf32>
    %27 = arith.addf %26, %25 : vector<1x256xf32>
    %cst_10 = arith.constant 9.99999974E-6 : f32
    %28 = vector.broadcast %cst_10 : f32 to vector<1x256xf32>
    %29 = arith.addf %27, %28 : vector<1x256xf32>
    %30 = math.log %29 : vector<1x256xf32>
    %c0_11 = arith.constant 0 : index
    %c0_12 = arith.constant 0 : index
    %31 = vector.load %arg4[%c0_11, %c0_12] : memref<4x1xf32, #tpu.memory_space<vmem>>, vector<4x1xf32>
    %32 = vector.broadcast %31 : vector<4x1xf32> to vector<4x256xf32>
    %33 = arith.mulf %11, %32 : vector<4x256xf32>
    %cst_13 = arith.constant dense<0.000000e+00> : vector<256xf32>
    %34 = vector.multi_reduction <add>, %33, %cst_13 [0] : vector<4x256xf32> to vector<256xf32>
    %35 = vector.shape_cast %34 : vector<256xf32> to vector<1x256xf32>
    %cst_14 = arith.constant 1.000000e+00 : f32
    %36 = vector.broadcast %cst_14 : f32 to vector<1x256xf32>
    %37 = arith.subf %36, %29 : vector<1x256xf32>
    %38 = arith.mulf %37, %37 : vector<1x256xf32>
    %cst_15 = arith.constant 0.000000e+00 : f32
    %39 = vector.broadcast %cst_15 : f32 to vector<1x256xf32>
    %40 = arith.subf %39, %35 : vector<1x256xf32>
    %41 = arith.mulf %40, %38 : vector<1x256xf32>
    %42 = arith.mulf %41, %30 : vector<1x256xf32>
    %c0_16 = arith.constant 0 : index
    %c0_17 = arith.constant 0 : index
    %43 = vector.load %arg6[%c0_16, %c0_17] : memref<1x256xf32, #tpu.memory_space<vmem>>, vector<1x256xf32>
    %44 = arith.addf %43, %42 : vector<1x256xf32>
    %c0_18 = arith.constant 0 : index
    %c0_19 = arith.constant 0 : index
    %45 = vector.load %arg6[%c0_18, %c0_19] : memref<1x256xf32, #tpu.memory_space<vmem>>, vector<1x256xf32>
    tpu.vector_store %arg6[%c0_18, %c0_19], %44 {strides = array<i32>} : memref<1x256xf32, #tpu.memory_space<vmem>>, vector<1x256xf32>,
    %c0_i32_20 = arith.constant 0 : i32
    %46 = arith.cmpi eq, %arg1, %c0_i32_20 : i32
    %47 = arith.extui %46 : i1 to i32
    %c0_i32_21 = arith.constant 0 : i32
    %48 = arith.cmpi ne, %47, %c0_i32_21 : i32
    scf.if %48 {
      %c0_22 = arith.constant 0 : index
      %c0_23 = arith.constant 0 : index
      %49 = vector.load %arg6[%c0_22, %c0_23] : memref<1x256xf32, #tpu.memory_space<vmem>>, vector<1x256xf32>
      %50 = vector.shape_cast %49 : vector<1x256xf32> to vector<1x1x256xf32>
      %cst_24 = arith.constant dense<0.000000e+00> : vector<1xf32>
      %51 = vector.multi_reduction <add>, %50, %cst_24 [1, 2] : vector<1x1x256xf32> to vector<1xf32>
      %52 = vector.shape_cast %51 : vector<1xf32> to vector<1x1x1xf32>
      %53 = vector.extract %52[0, 0, 0] : f32 from vector<1x1x1xf32>
      %54 = vector.broadcast %53 : f32 to vector<1x1x128xf32>
      %c0_25 = arith.constant 0 : index
      %c0_26 = arith.constant 0 : index
      %c0_27 = arith.constant 0 : index
      %55 = vector.load %arg5[%c0_25, %c0_26, %c0_27] : memref<1x1x128xf32, #tpu.memory_space<vmem>>, vector<1x1x128xf32>
      tpu.vector_store %arg5[%c0_25, %c0_26, %c0_27], %54 {strides = array<i32>} : memref<1x1x128xf32, #tpu.memory_space<vmem>>, vector<1x1x128xf32>,
    } else {
    }
    return
  }
  func.func @transform_0(%arg0: i32, %arg1: i32) -> (i32, i32, i32) {
    %c0_i32 = arith.constant 0 : i32
    %c0_i32_0 = arith.constant 0 : i32
    return %arg0, %c0_i32, %arg1 : i32, i32, i32
  }
  func.func @transform_1(%arg0: i32, %arg1: i32) -> (i32, i32, i32) {
    %c0_i32 = arith.constant 0 : i32
    %c0_i32_0 = arith.constant 0 : i32
    return %arg0, %c0_i32, %arg1 : i32, i32, i32
  }
  func.func @transform_2(%arg0: i32, %arg1: i32) -> (i32, i32) {
    %c0_i32 = arith.constant 0 : i32
    %c0_i32_0 = arith.constant 0 : i32
    %c0_i32_1 = arith.constant 0 : i32
    return %c0_i32, %c0_i32_0 : i32, i32
  }
  func.func @transform_3(%arg0: i32, %arg1: i32) -> (i32, i32, i32) {
    %c0_i32 = arith.constant 0 : i32
    %c0_i32_0 = arith.constant 0 : i32
    %c0_i32_1 = arith.constant 0 : i32
    return %arg0, %c0_i32, %c0_i32_0 : i32, i32, i32
  }
}

</mosaic_0001>

<bundles_post_ra>
// kernel: tpu_custom_call.1
= control target key start
LH: loop header
LB: loop body
LE: loop exit
PB: predicated region body
PF: predicated region fallthrough
CT: control target
= control target key end

     0   :  { %8 = vsyncpa [#allocation4], 0  ;;  %s981_s0 = inlined_call_operand.hbm [shape: f32[2,4,256], index: 0, kind: input, shape index: {}]   ;;  %s982_s1 = inlined_call_operand.vmem [shape: s32[2,1,256], index: 1, kind: input, shape index: {}]   ;;  %s983_s2 = inlined_call_operand.vmem [shape: f32[4,1], index: 2, kind: input, shape index: {}]   ;;  %s984_s3 = inlined_call_operand.hbm [shape: f32[2,1,128], index: 3, kind: output, shape index: {}]  }
   0x1   :  { %10 = vsyncpa [#allocation4 + $0x1], 0 }
   0x2   :  { %11 = vsyncpa [#allocation5], 0 }
   0x3   :  { %13 = vsyncpa [#allocation5 + $0x1], 0  ;;  %s761_s12 = smov 0   ;;  %s763_s13 = smov 0  }
   0x4   :  { %s765_s14 = smov 0   ;;  %s767_s15 = smov 0  }
   0x5   :  { %s769_s16 = smov 0   ;;  %s771_s17 = smov 0  }
   0x6 LB: > { %s527_s18 = sadd.s32 4294967295, %s734_s17   ;;  %s528_s19 = sadd.s32 4294967294, %s734_s17   ;;  %s734_s17 = sphi %s771_s17, %s19_s17   ;;  %s730_s16 = sphi %s769_s16, %s1002_s16   ;;  %s726_s15 = sphi %s767_s15, %s1001_s15   ;;  %s722_s14 = sphi %s765_s14, %s1000_s14   ;;  %s718_s13 = sphi %s763_s13, %s999_s13   ;;  %s714_s12 = sphi %s761_s12, %s998_s12  }
   0x7   : > { %s31_s20 = sadd.s32 1, %s730_s16  ;;  %s40_s21 = sadd.s32 1, %s722_s14 }
   0x8   : > { %p33_p0 = scmp.ge.s32.totalorder %s31_s20, 2  ;;  %p47_p1 = scmp.ne.s32.totalorder %s722_s14, %s718_s13 }
   0x9   : > { %p48_p2 = scmp.eq.s32.totalorder %s734_s17, 0  ;;  %p53_p3 = scmp.ne.s32.totalorder %s718_s13, %s714_s12 }
   0xa   : > { %s1004_s20 = smov (%p33_p0, %s31_s20), 0  ;;  %p54_p5 = scmp.eq.s32.totalorder %s527_s18, 0 }
   0xb   : > { %p802_p4 = por %p48_p2, %p47_p1  ;;  %s35_s23 = ssub.s32 %s730_s16, %s1004_s20 }
   0xc   : > { %p126_p6 = scmp.eq.s32.totalorder %s527_s18, 1  ;;  %p38_p7 = scmp.eq.s32.totalorder %s35_s23, 0 }
   0xd   : > { %p808_p8 = por %p54_p5, %p53_p3  ;;  %p132_p10 = scmp.eq.s32.totalorder %s528_s19, 1 }
   0xe   : > { %p812_p9 = por %p126_p6, %p47_p1  ;;  %p557_p13 = scmp.lt.s32.totalorder %s734_s17, 2 }
   0xf   : > { %s817_s26 = scalar_select %p38_p7, %s722_s14, %s40_s21  }
  0x10   : > { %s988_s25 = scalar_select %p812_p9, 1, 0 }
  0x11   : > { %p819_p11 = por %p132_p10, %p53_p3  ;;  %s155_s28 = sand.u32 1, %s722_s14  }
  0x12   : > { %s531_s29 = sshll.u32 %s155_s28, 3  ;;  %s542_s30 = sshll.u32 %s730_s16, 7 }
  0x13   : > { %s989_s27 = scalar_select %p819_p11, 1, 0 }
  0x14   : > { %s830_s6 = scalar_lea.hbm %s981_s0, %s542_s30  ;;  %s159_s7 = scalar_lea.vmem [#allocation3], %s531_s29 }
  0x15   : > { %s169_s8 = sshll.u32 %s159_s7, 4  ;;  %p836_p0 = pnand %p557_p13, %p802_p4  ;;  %s832_s8 = int_to_ptr.vmem [resolvable:$true] %s169_s8 }
  0x16   : > { %s156_s10 = scalar_lea.sflag [#allocation4], %s155_s28  ;;  %s622_s11 = scalar_lea.hbm %s830_s6, 128 }
  0x17   : > { %p623_p3 = scmp.ne.s32.totalorder %s830_s6, %s622_s11  ;;  %p624_p5 = pneg %p836_p0 }
  0x18   : > { %s627_s21 = scalar_lea.hbm %s981_s0, 256  ;;  %p628_p4 = scmp.lt.u32.totalorder %s830_s6, %s981_s0 }
  0x19   : > { %p625_p6 = pnand %p624_p5, %p623_p3  ;;  %p629_p10 = scmp.lt.u32.totalorder %s627_s21, %s622_s11 }
  0x1a   : > { %p631_p12 = scmp.lt.u32.totalorder %s622_s11, %s830_s6 }
  0x1b   : > { %p626_p7 = pneg %p625_p6  ;;  %p630_p13 = por %p629_p10, %p628_p4 }
  0x1d   : > { %p632_p1 = por %p631_p12, %p630_p13 }
  0x1f   : > { %p633_p2 = pnand %p632_p1, %p626_p7 }
  0x21   : > { %636 = shalt.err (!%p633_p2)
}
  0x22   : > { %s637_s28 = scalar_lea.vmem %s832_s8, 128  ;;  %s736_s29 = smov [#allocation3]  }
  0x23   : > { %p638_p3 = scmp.ne.s32.totalorder %s832_s8, %s637_s28  ;;  %s642_s30 = sshll.u32 %s736_s29, 4  ;;  %s643_s30 = int_to_ptr.vmem [resolvable:$false] %s642_s30 }
  0x24   : > { %s644_s4 = scalar_lea.vmem %s643_s30, 256  ;;  %p645_p9 = scmp.lt.s32.totalorder %s832_s8, %s643_s30 }
  0x25   : > { %p640_p6 = pnand %p638_p3, %p624_p5  ;;  %p646_p4 = scmp.lt.s32.totalorder %s644_s4, %s637_s28 }
  0x27   : > { %p641_p11 = pneg %p640_p6  ;;  %p647_p10 = por %p646_p4, %p645_p9 }
  0x29   : > { %p648_p12 = pnand %p647_p10, %p641_p11 }
  0x2b   : > { %651 = shalt.err (!%p648_p12)
}
  0x2c   : > { %552 = dma.hbm_to_vmem [thread:$0]  (!%p836_p0), %s830_s6, 128, %s832_s8, %s156_s10  }
  0x2d   : > { %p991_p1 = scmp.lt.s32.totalorder %s734_s17, 3  ;;  %p992_p2 = scmp.ge.s32.totalorder %s734_s17, 1 }
  0x2f   : > { %p187_p5 = pnand %p992_p2, %p991_p1 }
  0x30   : > { %s872_s5 = sand.u32 (!%p187_p5), 1, %s718_s13  }
  0x31   : > { %190 = sbr.rel (%p187_p5) target bundleno = 448 (0x1c0), region = 32  ;;  %s535_s7 = sshll.u32 (!%p187_p5), %s872_s5, 3 }
  0x32   : > { %s193_s11 = scalar_lea.sflag (!%p187_p5), [#allocation4], %s872_s5  ;;  %s196_s18 = scalar_lea.vmem (!%p187_p5), [#allocation3], %s535_s7 }
  0x38   : > { %705 = dma.done.wait (%p808_p8), %s193_s11, 128  }
  0x39   : > { %707 = vsyncadd (%p808_p8), %s193_s11, 4294967168  ;;  %p228_p9 = scmp.lt.s32.totalorder %s726_s15, 1  ;;  %v240_v0 = vlaneseq  ;;  %v737_v1 = vmov 0   ;;  %v738_v4 = vmov 0.0   ;;  %v335_v7 = vld [vmem:[%s983_s2] sm:$0xf] }
  0x3a   : > { %610 = vset.pattern.permute.xlu0 %v737_v1  ;;  %v245_v13 = vld [vmem:[%s196_s18] sm:$0xff]  ;;  %vm266_vm3 = vcmask 1043456   ;;  %vm407_vm4 = vcmask 1040384   ;;  %s225_s22 = scalar_lea.vmem [#allocation6], %s872_s5  ;;  %s539_s28 = sshll.u32 %s726_s15, 4 }
  0x3b   : > { %s229_s6 = scalar_select %p228_p9, %s726_s15, 1  ;;  %vm882_vm0 = vcmp.lt.s32.totalorder %v240_v0, 256  ;;  %v886_v3 = vshrl.u32 %v240_v0, 7  ;;  %338 = vperm.xlu0 %610, %v335_v7   ;;  %v264_v14 = vcombine.high %v245_v13, %v245_v13  ;;  %v267_v15 = vsel %vm266_vm3, %v245_v13, -inf }
  0x3c   : > { %244 = vst.msk [vmem:[#allocation2] sm:$0x3] %vm882_vm0, %v738_v4  ;;  %v268_v17 = vrot.slane %v267_v15, 4  ;;  %s435_s23 = sshll.u32 %s225_s22, 4  ;;  %s934_s7 = scalar_lea.hbm %s984_s3, %s539_s28  ;;  %s929_s23 = int_to_ptr.vmem [resolvable:$true] %s435_s23 }
  0x3d   : > { %s536_s8 = sshll.u32 %s229_s6, 1  ;;  %v251_v5 = vsub.s32 0, %v886_v3  ;;  %v255_v6 = vsub.s32 1, %v886_v3  ;;  %v274_v16 = vsel %vm266_vm3, %v264_v14, -inf  ;;  %s423_s11 = scalar_lea.sflag [#allocation5], %s872_s5 }
  0x3e   : > { %s234_s10 = scalar_lea.vmem %s982_s1, %s536_s8  ;;  %v275_v18 = vrot.slane %v274_v16, 4  ;;  %v269_v19 = vmax.f32 %v267_v15, %v268_v17  ;;  %s652_s18 = scalar_lea.vmem %s929_s23, 16 }
  0x3f   : > { %v246_v8 = vld [vmem:[%s234_s10] sm:$0x3]  ;;  %p653_p8 = scmp.ne.s32.totalorder %s929_s23, %s652_s18  ;;  %p995_p11 = scmp.ne.s32.totalorder %s988_s25, 0 }
  0x40   : > { %v252_v9 = vrot.slane %v246_v8, %v251_v5  ;;  %v256_v10 = vrot.slane %v246_v8, %v255_v6  ;;  %v276_v20 = vmax.f32 %v274_v16, %v275_v18  ;;  %v270_v21 = vrot.slane %v269_v19, 2  ;;  %s740_s15 = smov [#allocation6]  }
  0x41   : > { %p654_p0 = pnand %p653_p8, %p995_p11  ;;  %s656_s6 = sshll.u32 %s740_s15, 4  ;;  %s657_s6 = int_to_ptr.vmem [resolvable:$false] %s656_s6 }
  0x42   : > { %vm257_vm1 = vcmp.eq.s32.totalorder %v886_v3, %v252_v9  ;;  %vm258_vm2 = vcmp.eq.s32.totalorder %v886_v3, %v256_v10  ;;  %v277_v22 = vrot.slane %v276_v20, 2  ;;  %v271_v23 = vmax.f32 %v269_v19, %v270_v21  ;;  %s658_s8 = scalar_lea.vmem %s657_s6, 32  ;;  %p659_p13 = scmp.lt.s32.totalorder %s929_s23, %s657_s6 }
  0x43   : > { %v904_v11 = vsel %vm257_vm1, 1.0, %v738_v4  ;;  %v906_v12 = vsel %vm258_vm2, 1.0, %v738_v4  ;;  %p655_p7 = pneg %p654_p0  ;;  %p660_p3 = scmp.lt.s32.totalorder %s658_s8, %s652_s18 }
  0x44   : > { %v278_v24 = vmax.f32 %v276_v20, %v277_v22  ;;  %v272_v25 = vrot.slane %v271_v23, 1 }
  0x45   : > { %p661_p6 = por %p660_p3, %p659_p13 }
  0x46   : > { %v279_v26 = vrot.slane %v278_v24, 1  ;;  %v273_v27 = vmax.f32 %v271_v23, %v272_v25 }
  0x47   : > { %p662_p4 = pnand %p661_p6, %p655_p7 }
  0x48   : > { %v280_v28 = vmax.f32 %v278_v24, %v279_v26 }
  0x4a   : > { %v283_v29 = vcombine.low %v273_v27, %v280_v28 }
  0x4c   : > { %v285_v30 = vsub.f32 %v245_v13, %v283_v29 }
  0x4e   : > { %v286_v31 = vmul.f32 1.442695, %v285_v30 }
  0x50   : > { %612 = vpow2.f32 %v286_v31  ;;  %v739_v31 = vmov 1966171168  }
  0x5a   : > { %v613_v32 = vpop.eup %612 }
  0x5b   : > { %v289_v33 = vcombine.high %v613_v32, %v613_v32  ;;  %v291_v34 = vsel %vm266_vm3, %v613_v32, 0.0  ;;  %v305_v40 = vmul.f32 %v613_v32, %v904_v11 }
  0x5c   : > { %v292_v36 = vrot.slane %v291_v34, 4 }
  0x5d   : > { %v298_v35 = vsel %vm266_vm3, %v289_v33, 0.0  ;;  %v306_v41 = vmul.f32 %v906_v12, %v289_v33  ;;  %v307_v44 = vsel %vm266_vm3, %v305_v40, 0.0 }
  0x5e   : > { %v299_v37 = vrot.slane %v298_v35, 4  ;;  %v293_v38 = vadd.f32 %v292_v36, %v291_v34  ;;  %v308_v48 = vrot.slane %v307_v44, 4 }
  0x5f   : > { %v314_v45 = vsel %vm266_vm3, %v306_v41, 0.0 }
  0x60   : > { %v300_v39 = vadd.f32 %v299_v37, %v298_v35  ;;  %v294_v42 = vrot.slane %v293_v38, 2  ;;  %v315_v49 = vrot.slane %v314_v45, 4  ;;  %v309_v52 = vadd.f32 %v308_v48, %v307_v44 }
  0x62   : > { %v301_v43 = vrot.slane %v300_v39, 2  ;;  %v295_v46 = vadd.f32 %v294_v42, %v293_v38  ;;  %v316_v53 = vadd.f32 %v315_v49, %v314_v45  ;;  %v310_v56 = vrot.slane %v309_v52, 2 }
  0x64   : > { %v302_v47 = vadd.f32 %v301_v43, %v300_v39  ;;  %v296_v50 = vrot.slane %v295_v46, 1  ;;  %v317_v57 = vrot.slane %v316_v53, 2  ;;  %v311_v58 = vadd.f32 %v310_v56, %v309_v52 }
  0x66   : > { %v303_v51 = vrot.slane %v302_v47, 1  ;;  %v297_v54 = vadd.f32 %v296_v50, %v295_v46  ;;  %v318_v59 = vadd.f32 %v317_v57, %v316_v53  ;;  %v312_v60 = vrot.slane %v311_v58, 1 }
  0x68   : > { %v304_v55 = vadd.f32 %v303_v51, %v302_v47  ;;  %614 = vrcp.f32 %v297_v54  ;;  %v319_v61 = vrot.slane %v318_v59, 1  ;;  %v313_v62 = vadd.f32 %v312_v60, %v311_v58  ;;  %v367_v51 = vld [vmem:[#allocation2] sm:$0x3] }
  0x6a   : > { %616 = vrcp.f32 %v304_v55  ;;  %v320_v0 = vadd.f32 %v319_v61, %v318_v59 }
  0x72   : > { %v615_v63 = vpop.eup %614 }
  0x73   : > { %v323_v4 = vmul.f32 %v615_v63, %v313_v62 }
  0x74   : > { %v617_v1 = vpop.eup %616 }
  0x75   : > { %v324_v7 = vmul.f32 %v617_v1, %v320_v0  ;;  %v325_v8 = vmul.f32 0.99998665, %v323_v4 }
  0x77   : > { %v326_v9 = vmul.f32 0.99998665, %v324_v7  ;;  %v327_v10 = vadd.f32 3.3333333e-06, %v325_v8 }
  0x79   : > { %v328_v13 = vadd.f32 3.3333333e-06, %v326_v9  ;;  %v329_v14 = vadd.f32 1e-05, %v327_v10 }
  0x7b   : > { %v330_v15 = vadd.f32 1e-05, %v328_v13  ;;  %618 = vlog2.f32 %v329_v14  ;;  %v357_v29 = vsub.f32 1.0, %v329_v14 }
  0x7d   : > { %620 = vlog2.f32 %v330_v15  ;;  %v358_v30 = vsub.f32 1.0, %v330_v15  ;;  %v359_v37 = vmul.f32 %v357_v29, %v357_v29 }
  0x7f   : > { %v360_v38 = vmul.f32 %v358_v30, %v358_v30 }
  0x85   : > { %v619_v32 = vpop.eup %618 }
  0x86   : > { %v332_v40 = vmul.f32 0.6931472, %v619_v32 }
  0x87   : > { %v621_v34 = vpop.eup %620 }
  0x88   : > { %v334_v41 = vmul.f32 0.6931472, %v621_v34 }
  0xba   : > { %v339_v16 = vpop.permute.xlu0 %338 }
  0xbb   : > { %v341_v17 = vmul.f32 %v904_v11, %v339_v16  ;;  %v342_v18 = vmul.f32 %v906_v12, %v339_v16  ;;  %v372_v11 = vunpack.c.l.s4 %v739_v31 }
  0xbd   : > { %v343_v19 = vsel %vm266_vm3, %v341_v17, 0.0  ;;  %v350_v20 = vsel %vm266_vm3, %v342_v18, 0.0  ;;  %v373_v39 = vunpack.c.0.s8 %v372_v11 }
  0xbe   : > { %v344_v21 = vrot.slane %v343_v19, 4  ;;  %v351_v22 = vrot.slane %v350_v20, 4 }
  0xbf   : > { %v376_v46 = vsub.s32 %v373_v39, %v886_v3 }
  0xc0   : > { %v345_v23 = vadd.f32 %v344_v21, %v343_v19  ;;  %v352_v24 = vadd.f32 %v351_v22, %v350_v20 }
  0xc2   : > { %v346_v25 = vrot.slane %v345_v23, 2  ;;  %v353_v26 = vrot.slane %v352_v24, 2 }
  0xc4   : > { %v347_v27 = vadd.f32 %v346_v25, %v345_v23  ;;  %v354_v28 = vadd.f32 %v353_v26, %v352_v24 }
  0xc6   : > { %v348_v12 = vrot.slane %v347_v27, 1  ;;  %v355_v33 = vrot.slane %v354_v28, 1 }
  0xc8   : > { %v349_v35 = vadd.f32 %v348_v12, %v347_v27  ;;  %v356_v36 = vadd.f32 %v355_v33, %v354_v28 }
  0xca   : > { %v361_v42 = vsub.f32 0.0, %v349_v35  ;;  %v362_v43 = vsub.f32 0.0, %v356_v36 }
  0xcc   : > { %v363_v44 = vmul.f32 %v361_v42, %v359_v37  ;;  %v364_v45 = vmul.f32 %v362_v43, %v360_v38 }
  0xce   : > { %v365_v47 = vmul.f32 %v363_v44, %v332_v40  ;;  %v366_v48 = vmul.f32 %v364_v45, %v334_v41 }
  0xd0   : > { %v370_v49 = vcombine.low %v365_v47, %v366_v48 }
  0xd2   : > { %v377_v50 = vrot.slane %v370_v49, %v376_v46 }
  0xd4   : > { %v384_v52 = vrot.slane %v377_v50, %v376_v46 }
  0xd6   : > { %v386_v53 = vadd.f32 %v384_v52, %v367_v51 }
  0xd8   : > { %391 = vst.msk [vmem:[#allocation2] sm:$0x3] %vm882_vm0, %v386_v53 }
  0xdf   : > { %v395_v54 = vld [vmem:[#allocation2] sm:$0x3] }
  0xe0   : > { %v400_v55 = vrot.slane %v395_v54, %v251_v5  ;;  %v404_v56 = vrot.slane %v395_v54, %v255_v6 }
  0xe2   : > { %v408_v57 = vsel %vm407_vm4, %v400_v55, 0.0  ;;  %v409_v58 = vsel %vm407_vm4, %v404_v56, 0.0 }
  0xe3   : > { %v410_v59 = vadd.f32 %v409_v58, %v408_v57 }
  0xe5   : > { %411 = vadd.xlane.f32.xlu0 %v410_v59 }
 0x172   : > { %v412_v60 = vpop.xlane.xlu0 %411 }
 0x173   : > { %v413_v61 = vrot.slane %v412_v60, 4 }
 0x175   : > { %v414_v62 = vadd.f32 %v413_v61, %v412_v60 }
 0x177   : > { %v415_v2 = vrot.slane %v414_v62, 2 }
 0x179   : > { %v416_v63 = vadd.f32 %v415_v2, %v414_v62 }
 0x17b   : > { %v417_v0 = vrot.slane %v416_v63, 1 }
 0x17d   : > { %v418_v1 = vadd.f32 %v417_v0, %v416_v63 }
 0x17f   : > { %543 = vpush %v418_v1 }
 0x1b0   : > { %s544_s29 = spop %543 }
 0x1b1   : > { %v420_v3 = vstv %s544_s29 }
 0x1b2   : > { %421 = vst [vmem:[%s225_s22] sm:$0x1] %v420_v3 }
 0x1b3   : > { %665 = shalt.err (!%p662_p4)
}
 0x1b4   : > { %s666_s5 = scalar_lea.hbm %s934_s7, 16  ;;  %s670_s10 = scalar_lea.hbm %s984_s3, 32 }
 0x1b5   : > { %p667_p10 = scmp.ne.s32.totalorder %s934_s7, %s666_s5  ;;  %p671_p2 = scmp.lt.u32.totalorder %s934_s7, %s984_s3 }
 0x1b6   : > { %p672_p5 = scmp.lt.u32.totalorder %s670_s10, %s666_s5  ;;  %p674_p8 = scmp.lt.u32.totalorder %s666_s5, %s934_s7 }
 0x1b7   : > { %p668_p12 = pnand %p667_p10, %p995_p11 }
 0x1b8   : > { %p673_p9 = por %p672_p5, %p671_p2 }
 0x1b9   : > { %p669_p1 = pneg %p668_p12 }
 0x1ba   : > { %p675_p0 = por %p674_p8, %p673_p9 }
 0x1bc   : > { %p676_p7 = pnand %p675_p0, %p669_p1 }
 0x1be   : > { %679 = shalt.err (!%p676_p7)
}
 0x1bf   : > { %547 = dma.vmem_to_hbm [thread:$0]  (%p995_p11), %s929_s23, 16, %s934_s7, %s423_s11  }
 0x1c0 PF: > { %s447_s22 = sand.u32 1, %s714_s12   ;;  %p996_p13 = scmp.ne.s32.totalorder %s989_s27, 0 }
 0x1c1   : > { %p997_p3 = scmp.ge.s32.totalorder %s734_s17, 2  ;;  %s448_s28 = scalar_lea.sflag [#allocation5], %s447_s22 }
 0x1c3   : > { %p554_p6 = pnand %p997_p3, %p996_p13 }
 0x1c5   : > { %709 = dma.done.wait (!%p554_p6), %s448_s28, 16  }
 0x1c6   : > { %711 = vsyncadd (!%p554_p6), %s448_s28, 4294967280  ;;  %s19_s17 = sadd.s32 1, %s734_s17   ;;  %s998_s12 = smov %s718_s13 }
 0x1c7   : > { %p16_p4 = scmp.ge.s32.totalorder %s19_s17, 4   ;;  %s999_s13 = smov %s722_s14 }
 0x1c8   : > { %s1000_s14 = smov %s817_s26  ;;  %s1001_s15 = smov %s730_s16 }
 0x1c9   : > { %s1002_s16 = smov %s1004_s20  ;;  %18 = sbr.rel (!%p16_p4) target bundleno = 6 (0x6), region = 88 }
 0x1d0   :  { %452 = vsyncpa [#allocation4], 1 }
 0x1d1   :  { %454 = vsyncpa [#allocation4 + $0x1], 1 }
 0x1d2   :  { %455 = vsyncpa [#allocation5], 1 }
 0x1d3   :  { %457 = vsyncpa [#allocation5 + $0x1], 1 }

</bundles_post_ra>
